<compile_context>
chip_gen: v5e
topology: v5e:2x2
jax: 0.10.0
libtpu: 0.0.40
codegen_flags: <defaults>
</compile_context>

<pallas_src>
import functools

import jax
import jax.numpy as jnp
from jax.experimental import pallas as pl
from jax.experimental.pallas import tpu as pltpu

_LANE = 128


def _round_up(n, m):
    return ((n + m - 1) // m) * m


def _pad_axis(a, axis, target):
    pad = target - a.shape[axis]
    if pad == 0:
        return a
    widths = [(0, 0)] * a.ndim
    widths[axis] = (0, pad)
    return jnp.pad(a, widths)


def _default_elementwise_dtype():
    # bf16 elementwise on v6e/v7x (bf16 VPU); f32 on v5-class chips (no bf16 VALU).
    try:
        kind = jax.devices()[0].device_kind.lower()
    except Exception:  # pragma: no cover - defensive
        return jnp.float32
    if "v5" in kind or "v4" in kind:
        return jnp.float32
    return jnp.bfloat16


def critic_mlp_kernel(xT_ref, w1_ref, b1_ref, w2_ref, b2_ref, w3_ref, b3_ref, out_ref,
                      *, ew_dtype):
    # Layer 1 (feature-major): (H1p, in) @ (in, tile_b) -> (H1p, tile_b); batch on lanes.
    h1 = jnp.dot(w1_ref[...], xT_ref[...], preferred_element_type=jnp.float32)
    h1 = jnp.maximum(h1.astype(ew_dtype) + b1_ref[...], 0).astype(w2_ref.dtype)
    # Layer 2: (H2p, H1p) @ (H1p, tile_b) -> (H2p, tile_b).
    h2 = jnp.dot(w2_ref[...], h1, preferred_element_type=jnp.float32)
    h2 = jnp.maximum(h2.astype(ew_dtype) + b2_ref[...], 0).astype(w3_ref.dtype)
    # Layer 3: (1, H2p) @ (H2p, tile_b) -> (1, tile_b); lane-dense along batch, no
    # transpose of h2 needed.
    v = jnp.dot(w3_ref[...], h2, preferred_element_type=jnp.float32)
    out_ref[...] = (v + b3_ref[0, 0]).astype(out_ref.dtype)


def critic_forward(x, w1, b1, w2, b2, w3, b3, *, tile_b=1024,
                   compute_dtype=jnp.bfloat16, elementwise_dtype=None):
    """Pallas-fused forward of CriticNetwork.critic_network.

    x:  (B, input_dims) float32
    w*: PyTorch-native (out_features, in_features) float32
    b*: (out_features,) float32
    returns (B, 1) float32
    """
    B, in_dims = x.shape
    H1 = w1.shape[0]
    H2 = w2.shape[0]
    if elementwise_dtype is None:
        elementwise_dtype = _default_elementwise_dtype()

    H1p = _round_up(H1, _LANE)
    H2p = _round_up(H2, _LANE)

    # Batch tile must be a 128 multiple so every block is lane-dense along batch.
    assert tile_b % _LANE == 0
    Bp_min = _round_up(B, _LANE)
    tile_b = min(tile_b, Bp_min)
    # Keep >= 2 grid tiles (each >= 256) when the batch is big enough so the "parallel"
    # batch axis has work for both v7x TensorCores.
    if Bp_min >= 2 * 256 and Bp_min // tile_b < 2:
        tile_b = max(256, _round_up(pl.cdiv(Bp_min, 2), _LANE))
    Bp = _round_up(B, tile_b)
    num_tiles = Bp // tile_b

    # x^T keeps the batch on the 128-lane axis; pad only when B is not a tile multiple.
    # (Padded batch columns produce relu(b) garbage that is sliced off below -- never
    # reduce over the padded batch axis.)
    xT = _pad_axis(x.T, 1, Bp).astype(compute_dtype)                       # (in, Bp)

    # Weights stay in PyTorch (out, in) layout; zero-padding of hidden rows/cols is
    # mathematically inert (relu(0 + 0) = 0 multiplies zero weight columns downstream).
    w1p = _pad_axis(w1, 0, H1p).astype(compute_dtype)                      # (H1p, in)
    w2p = _pad_axis(_pad_axis(w2, 0, H2p), 1, H1p).astype(compute_dtype)   # (H2p, H1p)
    w3p = _pad_axis(w3, 1, H2p).astype(compute_dtype)                      # (1, H2p)
    b1p = _pad_axis(b1.reshape(-1, 1), 0, H1p).astype(elementwise_dtype)   # (H1p, 1)
    b2p = _pad_axis(b2.reshape(-1, 1), 0, H2p).astype(elementwise_dtype)   # (H2p, 1)
    b3s = b3.reshape(1, 1).astype(jnp.float32)                             # scalar -> SMEM

    itm = jnp.dtype(compute_dtype).itemsize
    ew_itm = jnp.dtype(elementwise_dtype).itemsize
    flops = 2 * Bp * (in_dims * H1p + H1p * H2p + H2p)
    bytes_accessed = (xT.size * itm
                      + (w1p.size + w2p.size + w3p.size) * itm
                      + (b1p.size + b2p.size) * ew_itm + 4
                      + Bp * 4)

    kernel = functools.partial(critic_mlp_kernel, ew_dtype=elementwise_dtype)

    out_row = pl.pallas_call(
        kernel,
        out_shape=jax.ShapeDtypeStruct((1, Bp), jnp.float32),
        grid=(num_tiles,),
        in_specs=[
            pl.BlockSpec((in_dims, tile_b), lambda i: (0, i)),   # x^T: batch-tiled, lane-dense
            pl.BlockSpec((H1p, in_dims), lambda i: (0, 0)),      # w1: VMEM-resident
            pl.BlockSpec((H1p, 1), lambda i: (0, 0)),            # b1 (column)
            pl.BlockSpec((H2p, H1p), lambda i: (0, 0)),          # w2
            pl.BlockSpec((H2p, 1), lambda i: (0, 0)),            # b2 (column)
            pl.BlockSpec((1, H2p), lambda i: (0, 0)),            # w3 (row vector)
            pl.BlockSpec(memory_space=pltpu.MemorySpace.SMEM),   # b3 scalar in SMEM
        ],
        out_specs=pl.BlockSpec((1, tile_b), lambda i: (0, i)),   # lane-dense along batch
        compiler_params=pltpu.CompilerParams(
            dimension_semantics=("parallel",)),
        cost_estimate=pl.CostEstimate(
            flops=flops, transcendentals=0, bytes_accessed=bytes_accessed),
    )(xT, w1p, b1p, w2p, b2p, w3p, b3s)

    row = out_row[0]
    if Bp != B:
        row = row[:B]
    return row.reshape(B, 1)


def init_linear_params(key, fan_in, fan_out):
    """Deterministic PyTorch-style (uniform +-1/sqrt(fan_in)) init, native (out, in) layout."""
    kw, kb = jax.random.split(key)
    bound = 1.0 / jnp.sqrt(jnp.float32(fan_in))
    w = jax.random.uniform(kw, (fan_out, fan_in), jnp.float32, -bound, bound)
    b = jax.random.uniform(kb, (fan_out,), jnp.float32, -bound, bound)
    return w, b


# TODO(synk): optimizer (Adam + weight decay), state-dict save/load, and device placement
# from the PyTorch module are training/IO concerns with no Pallas equivalent.

if __name__ == "__main__":
    # Small, forward-consistent shapes: input_dims=(8,), fc1=32, fc2=32 (n_actions unused).
    batch = 8
    input_dims = 8
    fc1_dims = 32
    fc2_dims = 32

    key = jax.random.PRNGKey(0)
    k_x, k1, k2, k3 = jax.random.split(key, 4)

    x = jax.random.normal(k_x, (batch, input_dims), jnp.float32)
    w1, b1 = init_linear_params(k1, input_dims, fc1_dims)
    w2, b2 = init_linear_params(k2, fc1_dims, fc2_dims)
    w3, b3 = init_linear_params(k3, fc2_dims, 1)

    fwd = jax.jit(critic_forward)
    out = jax.block_until_ready(fwd(x, w1, b1, w2, b2, w3, b3))
    assert out.shape == (batch, 1)

    # Tight check against a reference matching the kernel's exact arithmetic
    # (bf16 MXU operands, f32 accumulation, elementwise dtype chosen per chip).
    ew = _default_elementwise_dtype()
    cd = jnp.bfloat16
    xT_ref = x.T.astype(cd)
    h1 = jnp.dot(w1.astype(cd), xT_ref, preferred_element_type=jnp.float32)
    h1 = jnp.maximum(h1.astype(ew) + b1.reshape(-1, 1).astype(ew), 0).astype(cd)
    h2 = jnp.dot(w2.astype(cd), h1, preferred_element_type=jnp.float32)
    h2 = jnp.maximum(h2.astype(ew) + b2.reshape(-1, 1).astype(ew), 0).astype(cd)
    v = jnp.dot(w3.astype(cd), h2, preferred_element_type=jnp.float32) + b3.reshape(1, 1)
    ref_tight = v.T
    assert jnp.allclose(out, ref_tight, atol=1e-4, rtol=1e-4)

    # Loose check against the exact f32 PyTorch-equivalent forward.
    h1f = jnp.maximum(x @ w1.T + b1, 0.0)
    h2f = jnp.maximum(h1f @ w2.T + b2, 0.0)
    ref_f32 = h2f @ w3.T + b3
    assert jnp.allclose(out, ref_f32, atol=5e-2, rtol=5e-2)

    print("KERNEL_OK")
</pallas_src>

<mosaic_0001>
module attributes {stable_mosaic.version = 11 : i64} {
  func.func @critic_mlp_kernel(%arg0: i32, %arg1: memref<8x128xbf16, #tpu.memory_space<vmem>>, %arg2: memref<128x8xbf16, #tpu.memory_space<vmem>>, %arg3: memref<128x1xbf16, #tpu.memory_space<vmem>>, %arg4: memref<128x128xbf16, #tpu.memory_space<vmem>>, %arg5: memref<128x1xbf16, #tpu.memory_space<vmem>>, %arg6: memref<1x128xbf16, #tpu.memory_space<vmem>>, %arg7: memref<1x1xf32, #tpu.memory_space<smem>>, %arg8: memref<1x128xf32, #tpu.memory_space<vmem>>) attributes {dimension_semantics = [#tpu.dimension_semantics<parallel>], iteration_bounds = array<i64: 1>, scalar_prefetch = 0 : i64, scratch_operands = 0 : i64, tpu.core_type = #tpu.core_type<tc>, window_params = [{transform_indices = @transform_0, window_bounds = array<i64: 8, 128>}, {pipeline_mode = #tpu.pipeline_mode<synchronous>, transform_indices = @transform_1, window_bounds = array<i64: 128, 8>}, {pipeline_mode = #tpu.pipeline_mode<synchronous>, transform_indices = @transform_2, window_bounds = array<i64: 128, 1>}, {pipeline_mode = #tpu.pipeline_mode<synchronous>, transform_indices = @transform_3, window_bounds = array<i64: 128, 128>}, {pipeline_mode = #tpu.pipeline_mode<synchronous>, transform_indices = @transform_4, window_bounds = array<i64: 128, 1>}, {pipeline_mode = #tpu.pipeline_mode<synchronous>, transform_indices = @transform_5, window_bounds = array<i64: 1, 128>}, {transform_indices = @transform_6, window_bounds = array<i64: 1, 1>}, {transform_indices = @transform_7, window_bounds = array<i64: 1, 128>}]} {
    %c0 = arith.constant 0 : index
    %c0_0 = arith.constant 0 : index
    %0 = vector.load %arg2[%c0, %c0_0] : memref<128x8xbf16, #tpu.memory_space<vmem>>, vector<128x8xbf16>
    %c0_1 = arith.constant 0 : index
    %c0_2 = arith.constant 0 : index
    %1 = vector.load %arg1[%c0_1, %c0_2] : memref<8x128xbf16, #tpu.memory_space<vmem>>, vector<8x128xbf16>
    %cst = arith.constant dense<0.000000e+00> : vector<128x128xf32>
    %2 = tpu.matmul %0, %1, %cst {dimension_numbers = #tpu.dot_dimension_numbers<[1], [0], [0], [1], [0, 0, 1, 1], [], []>} : vector<128x8xbf16>, vector<8x128xbf16>, vector<128x128xf32> -> vector<128x128xf32>
    %3 = arith.truncf %2 : vector<128x128xf32> to vector<128x128xbf16>
    %c0_3 = arith.constant 0 : index
    %c0_4 = arith.constant 0 : index
    %4 = vector.load %arg3[%c0_3, %c0_4] : memref<128x1xbf16, #tpu.memory_space<vmem>>, vector<128x1xbf16>
    %5 = vector.broadcast %4 : vector<128x1xbf16> to vector<128x128xbf16>
    %6 = arith.addf %3, %5 : vector<128x128xbf16>
    %cst_5 = arith.constant 0.000000e+00 : bf16
    %7 = vector.broadcast %cst_5 : bf16 to vector<128x128xbf16>
    %8 = arith.maximumf %6, %7 : vector<128x128xbf16>
    %c0_6 = arith.constant 0 : index
    %c0_7 = arith.constant 0 : index
    %9 = vector.load %arg4[%c0_6, %c0_7] : memref<128x128xbf16, #tpu.memory_space<vmem>>, vector<128x128xbf16>
    %cst_8 = arith.constant dense<0.000000e+00> : vector<128x128xf32>
    %10 = tpu.matmul %9, %8, %cst_8 {dimension_numbers = #tpu.dot_dimension_numbers<[1], [0], [0], [1], [0, 0, 1, 1], [], []>} : vector<128x128xbf16>, vector<128x128xbf16>, vector<128x128xf32> -> vector<128x128xf32>
    %11 = arith.truncf %10 : vector<128x128xf32> to vector<128x128xbf16>
    %c0_9 = arith.constant 0 : index
    %c0_10 = arith.constant 0 : index
    %12 = vector.load %arg5[%c0_9, %c0_10] : memref<128x1xbf16, #tpu.memory_space<vmem>>, vector<128x1xbf16>
    %13 = vector.broadcast %12 : vector<128x1xbf16> to vector<128x128xbf16>
    %14 = arith.addf %11, %13 : vector<128x128xbf16>
    %cst_11 = arith.constant 0.000000e+00 : bf16
    %15 = vector.broadcast %cst_11 : bf16 to vector<128x128xbf16>
    %16 = arith.maximumf %14, %15 : vector<128x128xbf16>
    %c0_12 = arith.constant 0 : index
    %c0_13 = arith.constant 0 : index
    %17 = vector.load %arg6[%c0_12, %c0_13] : memref<1x128xbf16, #tpu.memory_space<vmem>>, vector<1x128xbf16>
    %cst_14 = arith.constant dense<0.000000e+00> : vector<1x128xf32>
    %18 = tpu.matmul %17, %16, %cst_14 {dimension_numbers = #tpu.dot_dimension_numbers<[1], [0], [0], [1], [0, 0, 1, 1], [], []>} : vector<1x128xbf16>, vector<128x128xbf16>, vector<1x128xf32> -> vector<1x128xf32>
    %c0_15 = arith.constant 0 : index
    %c0_16 = arith.constant 0 : index
    %19 = memref.load %arg7[%c0_15, %c0_16] : memref<1x1xf32, #tpu.memory_space<smem>>
    %20 = vector.broadcast %19 : f32 to vector<1x128xf32>
    %21 = arith.addf %18, %20 : vector<1x128xf32>
    %c0_17 = arith.constant 0 : index
    %c0_18 = arith.constant 0 : index
    %22 = vector.load %arg8[%c0_17, %c0_18] : memref<1x128xf32, #tpu.memory_space<vmem>>, vector<1x128xf32>
    tpu.vector_store %arg8[%c0_17, %c0_18], %21 {strides = array<i32>} : memref<1x128xf32, #tpu.memory_space<vmem>>, vector<1x128xf32>,
    return
  }
  func.func @transform_0(%arg0: i32) -> (i32, i32) {
    %c0_i32 = arith.constant 0 : i32
    %c0_i32_0 = arith.constant 0 : i32
    return %c0_i32, %arg0 : i32, i32
  }
  func.func @transform_1(%arg0: i32) -> (i32, i32) {
    %c0_i32 = arith.constant 0 : i32
    %c0_i32_0 = arith.constant 0 : i32
    %c0_i32_1 = arith.constant 0 : i32
    return %c0_i32, %c0_i32_0 : i32, i32
  }
  func.func @transform_2(%arg0: i32) -> (i32, i32) {
    %c0_i32 = arith.constant 0 : i32
    %c0_i32_0 = arith.constant 0 : i32
    %c0_i32_1 = arith.constant 0 : i32
    return %c0_i32, %c0_i32_0 : i32, i32
  }
  func.func @transform_3(%arg0: i32) -> (i32, i32) {
    %c0_i32 = arith.constant 0 : i32
    %c0_i32_0 = arith.constant 0 : i32
    %c0_i32_1 = arith.constant 0 : i32
    return %c0_i32, %c0_i32_0 : i32, i32
  }
  func.func @transform_4(%arg0: i32) -> (i32, i32) {
    %c0_i32 = arith.constant 0 : i32
    %c0_i32_0 = arith.constant 0 : i32
    %c0_i32_1 = arith.constant 0 : i32
    return %c0_i32, %c0_i32_0 : i32, i32
  }
  func.func @transform_5(%arg0: i32) -> (i32, i32) {
    %c0_i32 = arith.constant 0 : i32
    %c0_i32_0 = arith.constant 0 : i32
    %c0_i32_1 = arith.constant 0 : i32
    return %c0_i32, %c0_i32_0 : i32, i32
  }
  func.func @transform_6(%arg0: i32) -> (i32, i32) {
    %c0_i32 = arith.constant 0 : i32
    %c0_i32_0 = arith.constant 0 : i32
    %c0_i32_1 = arith.constant 0 : i32
    return %c0_i32, %c0_i32_0 : i32, i32
  }
  func.func @transform_7(%arg0: i32) -> (i32, i32) {
    %c0_i32 = arith.constant 0 : i32
    %c0_i32_0 = arith.constant 0 : i32
    return %c0_i32, %arg0 : i32, i32
  }
}

</mosaic_0001>

<bundles_post_ra>
// kernel: critic_forward.1
= control target key start
LH: loop header
LB: loop body
LE: loop exit
PB: predicated region body
PF: predicated region fallthrough
CT: control target
= control target key end

     0   :  { %vm110_vm0 = vcmask 1043456   ;;  %v959_v0 = vmov 0   ;;  %vm85_vm1 = vcmask 64512   ;;  %v960_v58 = vmov 839922192   ;;  %s1267_s2 = inlined_call_operand.vmem [shape: bf16[128,1], index: 2, kind: input, shape index: {}]   ;;  %s1268_s0 = inlined_call_operand.vmem [shape: bf16[8,128], index: 0, kind: input, shape index: {}]   ;;  %s1269_s1 = inlined_call_operand.vmem [shape: bf16[128,8], index: 1, kind: input, shape index: {}]   ;;  %s1270_s4 = inlined_call_operand.vmem [shape: bf16[128,1], index: 4, kind: input, shape index: {}]   ;;  %s1271_s3 = inlined_call_operand.vmem [shape: bf16[128,128], index: 3, kind: input, shape index: {}]   ;;  %s1272_s5 = inlined_call_operand.vmem [shape: bf16[1,128], index: 5, kind: input, shape index: {}]   ;;  %s1273_s6 = inlined_call_operand.<no memory space> [shape: f32[1,1], index: 6, kind: input, shape index: {}]   ;;  %s1274_s7 = inlined_call_operand.vmem [shape: f32[1,128], index: 7, kind: output, shape index: {}]  }
   0x1   :  { %956 = vset.pattern.permute.xlu0 %v959_v0  ;;  %v193_v1 = vld [vmem:[%s1267_s2 + $0x38] sm:$0xf]  ;;  %v44_v2 = vld [vmem:[%s1268_s0] sm:$0xf]  ;;  %958 = vset.pattern.permute.xlu2 %v959_v0  ;;  %v191_v5 = vld [vmem:[%s1267_s2 + $0x30] sm:$0xf]  ;;  %v201_v59 = vunpack.c.l.s4 %v960_v58 }
   0x2   :  { %323 = vperm.xlu0 %956, %v193_v1   ;;  %v112_v3 = vsel %vm110_vm0, %v44_v2, 0  ;;  %v929_v4 = vld [vmem:[%s1269_s1] sm:$0xff]  ;;  %957 = vset.pattern.permute.xlu1 %v959_v0  ;;  %v189_v6 = vld [vmem:[%s1267_s2 + $0x28] sm:$0xf]  ;;  %v935_v7 = vld [vmem:[%s1269_s1 + $0x30] sm:$0xff] }
   0x3   :  { %121 = vmatpush.bf16.msra.mxu0 %v112_v3  ;;  %305 = vperm.xlu1 %957, %v191_v5   ;;  %v194_v8 = vld [vmem:[%s1267_s2 + $0x3c] sm:$0xf]  ;;  %v192_v9 = vld [vmem:[%s1267_s2 + $0x34] sm:$0xf]  ;;  %v190_v10 = vld [vmem:[%s1267_s2 + $0x2c] sm:$0xf]  ;;  %v1148_v61 = vunpack.c.0.s8 %v201_v59 }
   0x4   :  { %287 = vperm.xlu2 %958, %v189_v6   ;;  %945 = vmatpush.bf16.msra.mxu2 %v112_v3  ;;  %v187_v11 = vld [vmem:[%s1267_s2 + $0x20] sm:$0xf]  ;;  %v188_v12 = vld [vmem:[%s1267_s2 + $0x24] sm:$0xf]  ;;  %v185_v13 = vld [vmem:[%s1267_s2 + $0x18] sm:$0xf] }
   0x5   :  { %v930_v14 = vld [vmem:[%s1269_s1 + $0x8] sm:$0xff]  ;;  %v936_v15 = vld [vmem:[%s1269_s1 + $0x38] sm:$0xff]  ;;  %v183_v17 = vld [vmem:[%s1267_s2 + $0x10] sm:$0xf] }
   0x6   :  { %889 = vmatmul.msk.bf16.vlgmr.msra.gmra.mxu0 %vm85_vm1, %v929_v4  ;;  %v186_v16 = vld [vmem:[%s1267_s2 + $0x1c] sm:$0xf]  ;;  %v184_v18 = vld [vmem:[%s1267_s2 + $0x14] sm:$0xf]  ;;  %v181_v19 = vld [vmem:[%s1267_s2 + $0x8] sm:$0xf] }
   0x7   :  { %895 = vmatmul.msk.bf16.vlgmr.msra.gmra.mxu2 %vm85_vm1, %v935_v7  ;;  %v182_v20 = vld [vmem:[%s1267_s2 + $0xc] sm:$0xf]  ;;  %v179_v21 = vld [vmem:[%s1267_s2] sm:$0xf]  ;;  %v931_v22 = vld [vmem:[%s1269_s1 + $0x10] sm:$0xff] }
   0x8   :  { %v180_v23 = vld [vmem:[%s1267_s2 + $0x4] sm:$0xf]  ;;  %v586_v24 = vld [vmem:[%s1270_s4 + $0x38] sm:$0xf]  ;;  %v584_v25 = vld [vmem:[%s1270_s4 + $0x30] sm:$0xf] }
   0x9   :  { %v585_v26 = vld [vmem:[%s1270_s4 + $0x34] sm:$0xf]  ;;  %v932_v27 = vld [vmem:[%s1269_s1 + $0x18] sm:$0xff]  ;;  %v583_v29 = vld [vmem:[%s1270_s4 + $0x2c] sm:$0xf] }
   0xa   :  { %332 = vperm.xlu0 %956, %v194_v8   ;;  %v587_v28 = vld [vmem:[%s1270_s4 + $0x3c] sm:$0xf]  ;;  %v580_v30 = vld [vmem:[%s1270_s4 + $0x20] sm:$0xf]  ;;  %v582_v31 = vld [vmem:[%s1270_s4 + $0x28] sm:$0xf] }
   0xb   :  { %314 = vperm.xlu1 %957, %v192_v9   ;;  %v578_v32 = vld [vmem:[%s1270_s4 + $0x18] sm:$0xf]  ;;  %v579_v33 = vld [vmem:[%s1270_s4 + $0x1c] sm:$0xf]  ;;  %v581_v34 = vld [vmem:[%s1270_s4 + $0x24] sm:$0xf] }
   0xc   :  { %296 = vperm.xlu2 %958, %v190_v10   ;;  %v933_v35 = vld [vmem:[%s1269_s1 + $0x20] sm:$0xff]  ;;  %v577_v36 = vld [vmem:[%s1270_s4 + $0x14] sm:$0xf]  ;;  %v574_v37 = vld [vmem:[%s1270_s4 + $0x8] sm:$0xf] }
   0xd   :  { %v576_v38 = vld [vmem:[%s1270_s4 + $0x10] sm:$0xf]  ;;  %v572_v39 = vld [vmem:[%s1270_s4] sm:$0xf]  ;;  %v573_v40 = vld [vmem:[%s1270_s4 + $0x4] sm:$0xf] }
   0xe   :  { %v934_v41 = vld [vmem:[%s1269_s1 + $0x28] sm:$0xff] }
   0xf   :  { %v575_v42 = vld [vmem:[%s1270_s4 + $0xc] sm:$0xf] }
  0x12   :  { %269 = vperm.xlu0 %956, %v187_v11  }
  0x13   :  { %278 = vperm.xlu1 %957, %v188_v12  }
  0x14   :  { %251 = vperm.xlu2 %958, %v185_v13  }
  0x16   :  { %890 = vmatmul.msk.bf16.gmra.mxu0 %vm85_vm1, %v930_v14 }
  0x17   :  { %896 = vmatmul.msk.bf16.gmra.mxu2 %vm85_vm1, %v936_v15 }
  0x1a   :  { %260 = vperm.xlu0 %956, %v186_v16  }
  0x1b   :  { %233 = vperm.xlu1 %957, %v183_v17  }
  0x1c   :  { %242 = vperm.xlu2 %958, %v184_v18  }
  0x22   :  { %215 = vperm.xlu0 %956, %v181_v19  }
  0x23   :  { %224 = vperm.xlu1 %957, %v182_v20  }
  0x24   :  { %197 = vperm.xlu2 %958, %v179_v21  }
  0x26   :  { %891 = vmatmul.msk.bf16.gmra.mxu0 %vm85_vm1, %v931_v22 }
  0x2a   :  { %206 = vperm.xlu0 %956, %v180_v23  }
  0x2b   :  { %716 = vperm.xlu1 %957, %v586_v24  }
  0x2c   :  { %725 = vperm.xlu2 %958, %v587_v28  }
  0x32   :  { %698 = vperm.xlu0 %956, %v584_v25  }
  0x33   :  { %707 = vperm.xlu1 %957, %v585_v26  }
  0x34   :  { %680 = vperm.xlu2 %958, %v582_v31  }
  0x36   :  { %892 = vmatmul.msk.bf16.gmra.mxu0 %vm85_vm1, %v932_v27 }
  0x3a   :  { %689 = vperm.xlu0 %956, %v583_v29  }
  0x3b   :  { %662 = vperm.xlu1 %957, %v580_v30  }
  0x3c   :  { %671 = vperm.xlu2 %958, %v581_v34  }
  0x42   :  { %644 = vperm.xlu0 %956, %v578_v32  }
  0x43   :  { %653 = vperm.xlu1 %957, %v579_v33  }
  0x44   :  { %626 = vperm.xlu2 %958, %v576_v38  }
  0x46   :  { %893 = vmatmul.msk.bf16.gmra.mxu0 %vm85_vm1, %v933_v35 }
  0x4a   :  { %635 = vperm.xlu0 %956, %v577_v36  }
  0x4b   :  { %608 = vperm.xlu1 %957, %v574_v37  }
  0x4c   :  { %617 = vperm.xlu2 %958, %v575_v42  }
  0x52   :  { %590 = vperm.xlu0 %956, %v572_v39  }
  0x53   :  { %599 = vperm.xlu1 %957, %v573_v40  }
  0x56   :  { %894 = vmatmul.msk.bf16.gmra.mxu0 %vm85_vm1, %v934_v41 }
  0x5e   :  { %v1132_v43 = vpop.permute.xlu2 %287 }
  0x66   :  { %v1134_v46 = vpop.permute.xlu2 %296 }
  0x6e   :  { %v1136_v49 = vpop.permute.xlu2 %251 }
  0x74   :  { %v324_v44 = vpop.permute.xlu0 %323 }
  0x75   :  { %v306_v45 = vpop.permute.xlu1 %305  ;;  %v329_v7 = vperm.slane %v324_v44, %v1148_v61 }
  0x76   :  { %v1142_v53 = vpop.permute.xlu2 %242  ;;  %v311_v16 = vperm.slane %v306_v45, %v1148_v61 }
  0x77   :  { %v369_v24 = vunpack.c.l.bf16 %v329_v7 }
  0x78   :  { %v367_v32 = vunpack.c.l.bf16 %v311_v16 }
  0x7c   :  { %v333_v47 = vpop.permute.xlu0 %332 }
  0x7d   :  { %v315_v48 = vpop.permute.xlu1 %314  ;;  %v338_v25 = vperm.slane %v333_v47, %v1148_v61 }
  0x7e   :  { %v198_v63 = vpop.permute.xlu2 %197  ;;  %v320_v20 = vperm.slane %v315_v48, %v1148_v61 }
  0x7f   :  { %v203_v4 = vperm.slane %v198_v63, %v1148_v61  ;;  %v370_v38 = vunpack.c.l.bf16 %v338_v25 }
  0x80   :  { %v368_v34 = vunpack.c.l.bf16 %v320_v20 }
  0x81   :  { %v355_v11 = vunpack.c.l.bf16 %v203_v4 }
  0x83   :  { %v123_v50 = vpop.f32.mrf.mxu0 }
  0x84   :  { %v1138_v51 = vpop.permute.xlu0 %269  ;;  %v163_v5 = vpack.c.bf16 %v123_v50, %v123_v50 }
  0x85   :  { %v1140_v52 = vpop.permute.xlu1 %278 }
  0x86   :  { %v339_v12 = vunpack.c.l.bf16 %v163_v5 }
  0x88   :  { %v371_v28 = vadd.f32 %v355_v11, %v339_v12  ;;  %v293_v11 = vperm.slane %v1132_v43, %v1148_v61  ;;  %v284_v12 = vperm.slane %v1140_v52, %v1148_v61  ;;  %v257_v52 = vperm.slane %v1136_v49, %v1148_v61 }
  0x8a   :  { %v153_v54 = vpop.f32.mrf.mxu2  ;;  %v419_v47 = vmax.f32 %v371_v28, 0.0  ;;  %v248_v28 = vperm.slane %v1142_v53, %v1148_v61 }
  0x8b   :  { %v125_v55 = vpop.f32.mrf.mxu0  ;;  %v175_v22 = vpack.c.bf16 %v153_v54, %v153_v54 }
  0x8c   :  { %v1144_v56 = vpop.permute.xlu0 %260  ;;  %v164_v13 = vpack.c.bf16 %v125_v55, %v125_v55 }
  0x8d   :  { %v1146_v57 = vpop.permute.xlu1 %233  ;;  %v351_v36 = vunpack.c.l.bf16 %v175_v22 }
  0x8e   :  { %v340_v29 = vunpack.c.l.bf16 %v164_v13 }
  0x8f   :  { %v383_v54 = vadd.f32 %v367_v32, %v351_v36 }
  0x92   :  { %v155_v60 = vpop.f32.mrf.mxu2 }
  0x93   :  { %v128_v62 = vpop.f32.mrf.mxu0  ;;  %v176_v23 = vpack.c.bf16 %v155_v60, %v155_v60 }
  0x94   :  { %v216_v0 = vpop.permute.xlu0 %215  ;;  %v165_v2 = vpack.c.bf16 %v128_v62, %v128_v62 }
  0x95   :  { %v225_v1 = vpop.permute.xlu1 %224  ;;  %v221_v3 = vperm.slane %v216_v0, %v1148_v61  ;;  %v352_v37 = vunpack.c.l.bf16 %v176_v23  ;;  %v431_v0 = vmax.f32 %v383_v54, 0.0 }
  0x96   :  { %v230_v6 = vperm.slane %v225_v1, %v1148_v61  ;;  %v341_v8 = vunpack.c.l.bf16 %v165_v2 }
  0x97   :  { %v357_v9 = vunpack.c.l.bf16 %v221_v3  ;;  %v384_v55 = vadd.f32 %v368_v34, %v352_v37  ;;  %v239_v34 = vperm.slane %v1146_v57, %v1148_v61 }
  0x98   :  { %v358_v17 = vunpack.c.l.bf16 %v230_v6 }
  0x99   :  { %v373_v26 = vadd.f32 %v357_v9, %v341_v8  ;;  %v432_v1 = vmax.f32 %v384_v55, 0.0 }
  0x9a   :  { %v158_v10 = vpop.f32.mrf.mxu2 }
  0x9b   :  { %v130_v14 = vpop.f32.mrf.mxu0  ;;  %v177_v15 = vpack.c.bf16 %v158_v10, %v158_v10  ;;  %v421_v40 = vmax.f32 %v373_v26, 0.0  ;;  %v441_v4 = vpack.c.bf16 %v432_v1, %v431_v0 }
  0x9c   :  { %v166_v18 = vpack.c.bf16 %v130_v14, %v130_v14  ;;  %v207_v19 = vpop.permute.xlu0 %206  ;;  %v302_v14 = vperm.slane %v1134_v46, %v1148_v61 }
  0x9d   :  { %v212_v21 = vperm.slane %v207_v19, %v1148_v61  ;;  %v353_v31 = vunpack.c.l.bf16 %v177_v15  ;;  %v275_v15 = vperm.slane %v1138_v51, %v1148_v61  ;;  %v266_v19 = vperm.slane %v1144_v56, %v1148_v61 }
  0x9e   :  { %v342_v27 = vunpack.c.l.bf16 %v166_v18  ;;  %v365_v18 = vunpack.c.l.bf16 %v293_v11 }
  0x9f   :  { %v356_v30 = vunpack.c.l.bf16 %v212_v21  ;;  %v385_v44 = vadd.f32 %v369_v24, %v353_v31  ;;  %v364_v21 = vunpack.c.l.bf16 %v284_v12  ;;  %v366_v24 = vunpack.c.l.bf16 %v302_v14 }
  0xa0   :  { %v374_v33 = vadd.f32 %v358_v17, %v342_v27  ;;  %v363_v25 = vunpack.c.l.bf16 %v275_v15 }
  0xa1   :  { %v372_v35 = vadd.f32 %v356_v30, %v340_v29  ;;  %v433_v62 = vmax.f32 %v385_v44, 0.0  ;;  %v362_v29 = vunpack.c.l.bf16 %v266_v19 }
  0xa2   :  { %v160_v39 = vpop.f32.mrf.mxu2  ;;  %v422_v41 = vmax.f32 %v374_v33, 0.0  ;;  %v361_v33 = vunpack.c.l.bf16 %v257_v52 }
  0xa3   :  { %v1158_v42 = vpop.f32.mrf.mxu0  ;;  %v178_v45 = vpack.c.bf16 %v160_v39, %v160_v39  ;;  %v420_v48 = vmax.f32 %v372_v35, 0.0  ;;  %v360_v39 = vunpack.c.l.bf16 %v248_v28 }
  0xa4   :  { %v1160_v50 = vpack.c.bf16 %v422_v41, %v421_v40  ;;  %v167_v49 = vpack.c.bf16 %v1158_v42, %v1158_v42 }
  0xa5   :  { %v354_v58 = vunpack.c.l.bf16 %v178_v45  ;;  %v1162_v59 = vpack.c.bf16 %v420_v48, %v419_v47  ;;  %v359_v45 = vunpack.c.l.bf16 %v239_v34 }
  0xa6   :  { %v343_v47 = vunpack.c.l.bf16 %v167_v49 }
  0xa7   :  { %v386_v60 = vadd.f32 %v370_v38, %v354_v58 }
  0xa9   :  { %v434_v63 = vmax.f32 %v386_v60, 0.0  ;;  %v375_v60 = vadd.f32 %v359_v45, %v343_v47 }
  0xab   :  { %v135_v2 = vpop.f32.mrf.mxu0  ;;  %v442_v3 = vpack.c.bf16 %v434_v63, %v433_v62  ;;  %v423_v0 = vmax.f32 %v375_v60, 0.0 }
  0xac   :  { %v168_v30 = vpack.c.bf16 %v135_v2, %v135_v2  ;;  %v937_v2 = vld [vmem:[%s1271_s3] sm:$0xff] }
  0xad   :  { %507 = vmatpush.bf16.msra.mxu1 %v442_v3  ;;  %946 = vmatpush.bf16.msra.mxu3 %v442_v3  ;;  %v941_v3 = vld [vmem:[%s1271_s3 + $0x20] sm:$0xff] }
  0xae   :  { %v344_v40 = vunpack.c.l.bf16 %v168_v30 }
  0xb0   :  { %v376_v55 = vadd.f32 %v360_v39, %v344_v40 }
  0xb1   :  { %508 = vmatpush.bf16.msra.mxu1 %v441_v4  ;;  %947 = vmatpush.bf16.msra.mxu3 %v441_v4  ;;  %v938_v4 = vld [vmem:[%s1271_s3 + $0x8] sm:$0xff] }
  0xb2   :  { %v424_v63 = vmax.f32 %v376_v55, 0.0 }
  0xb3   :  { %v138_v5 = vpop.f32.mrf.mxu0 }
  0xb4   :  { %v169_v46 = vpack.c.bf16 %v138_v5, %v138_v5  ;;  %v437_v1 = vpack.c.bf16 %v424_v63, %v423_v0  ;;  %v939_v5 = vld [vmem:[%s1271_s3 + $0x10] sm:$0xff] }
  0xb6   :  { %v345_v35 = vunpack.c.l.bf16 %v169_v46 }
  0xb8   :  { %v377_v48 = vadd.f32 %v361_v33, %v345_v35 }
  0xba   :  { %v425_v42 = vmax.f32 %v377_v48, 0.0 }
  0xbb   :  { %v140_v6 = vpop.f32.mrf.mxu0 }
  0xbc   :  { %v170_v22 = vpack.c.bf16 %v140_v6, %v140_v6  ;;  %v940_v6 = vld [vmem:[%s1271_s3 + $0x18] sm:$0xff] }
  0xbe   :  { %v346_v56 = vunpack.c.l.bf16 %v170_v22 }
  0xc0   :  { %v378_v41 = vadd.f32 %v362_v29, %v346_v56 }
  0xc2   :  { %v426_v58 = vmax.f32 %v378_v41, 0.0 }
  0xc3   :  { %v143_v7 = vpop.f32.mrf.mxu0 }
  0xc4   :  { %v171_v16 = vpack.c.bf16 %v143_v7, %v143_v7  ;;  %v438_v62 = vpack.c.bf16 %v426_v58, %v425_v42  ;;  %v944_v7 = vld [vmem:[%s1271_s3 + $0x38] sm:$0xff] }
  0xc6   :  { %v347_v26 = vunpack.c.l.bf16 %v171_v16  ;;  %v717_v16 = vpop.permute.xlu1 %716 }
  0xc8   :  { %v379_v36 = vadd.f32 %v363_v25, %v347_v26 }
  0xca   :  { %v427_v54 = vmax.f32 %v379_v36, 0.0 }
  0xcb   :  { %v145_v8 = vpop.f32.mrf.mxu0 }
  0xcc   :  { %v172_v13 = vpack.c.bf16 %v145_v8, %v145_v8 }
  0xce   :  { %v348_v43 = vunpack.c.l.bf16 %v172_v13 }
  0xd0   :  { %v380_v31 = vadd.f32 %v364_v21, %v348_v43  ;;  %v699_v21 = vpop.permute.xlu0 %698 }
  0xd1   :  { %v704_v49 = vperm.slane %v699_v21, %v1148_v61 }
  0xd2   :  { %v428_v44 = vmax.f32 %v380_v31, 0.0 }
  0xd3   :  { %v148_v9 = vpop.f32.mrf.mxu0  ;;  %v760_v55 = vunpack.c.l.bf16 %v704_v49 }
  0xd4   :  { %v173_v10 = vpack.c.bf16 %v148_v9, %v148_v9  ;;  %v439_v57 = vpack.c.bf16 %v428_v44, %v427_v54 }
  0xd6   :  { %v349_v17 = vunpack.c.l.bf16 %v173_v10 }
  0xd8   :  { %v381_v27 = vadd.f32 %v365_v18, %v349_v17  ;;  %v726_v17 = vpop.permute.xlu2 %725  ;;  %v690_v52 = vpop.permute.xlu0 %689 }
  0xd9   :  { %v731_v30 = vperm.slane %v726_v17, %v1148_v61  ;;  %v695_v40 = vperm.slane %v690_v52, %v1148_v61 }
  0xda   :  { %v429_v38 = vmax.f32 %v381_v27, 0.0  ;;  %v722_v27 = vperm.slane %v717_v16, %v1148_v61 }
  0xdb   :  { %v150_v20 = vpop.f32.mrf.mxu0  ;;  %v763_v41 = vunpack.c.l.bf16 %v731_v30 }
  0xdc   :  { %v174_v23 = vpack.c.bf16 %v150_v20, %v150_v20  ;;  %v708_v20 = vpop.permute.xlu1 %707  ;;  %v762_v33 = vunpack.c.l.bf16 %v722_v27 }
  0xdd   :  { %v713_v29 = vperm.slane %v708_v20, %v1148_v61 }
  0xde   :  { %v350_v51 = vunpack.c.l.bf16 %v174_v23 }
  0xdf   :  { %v761_v39 = vunpack.c.l.bf16 %v713_v29 }
  0xe0   :  { %v382_v32 = vadd.f32 %v366_v24, %v350_v51  ;;  %v681_v43 = vpop.permute.xlu2 %680  ;;  %v645_v35 = vpop.permute.xlu0 %644 }
  0xe1   :  { %v686_v48 = vperm.slane %v681_v43, %v1148_v61 }
  0xe2   :  { %v430_v37 = vmax.f32 %v382_v32, 0.0 }
  0xe4   :  { %v440_v53 = vpack.c.bf16 %v430_v37, %v429_v38  ;;  %v663_v24 = vpop.permute.xlu1 %662 }
  0xe6   :  { %509 = vmatpush.bf16.msra.mxu1 %v440_v53  ;;  %948 = vmatpush.bf16.msra.mxu3 %v440_v53 }
  0xe8   :  { %v672_v46 = vpop.permute.xlu2 %671  ;;  %v636_v20 = vpop.permute.xlu0 %635 }
  0xe9   :  { %v677_v63 = vperm.slane %v672_v46, %v1148_v61  ;;  %v641_v30 = vperm.slane %v636_v20, %v1148_v61 }
  0xea   :  { %510 = vmatpush.bf16.msra.mxu1 %v439_v57  ;;  %949 = vmatpush.bf16.msra.mxu3 %v439_v57 }
  0xec   :  { %v654_v56 = vpop.permute.xlu1 %653 }
  0xed   :  { %v659_v17 = vperm.slane %v654_v56, %v1148_v61 }
  0xee   :  { %511 = vmatpush.bf16.msra.mxu1 %v438_v62  ;;  %950 = vmatpush.bf16.msra.mxu3 %v438_v62  ;;  %v759_v62 = vunpack.c.l.bf16 %v695_v40 }
  0xef   :  { %v755_v29 = vunpack.c.l.bf16 %v659_v17 }
  0xf0   :  { %v627_v57 = vpop.permute.xlu2 %626 }
  0xf1   :  { %v632_v49 = vperm.slane %v627_v57, %v1148_v61 }
  0xf2   :  { %512 = vmatpush.bf16.msra.mxu1 %v437_v1  ;;  %951 = vmatpush.bf16.msra.mxu3 %v437_v1 }
  0xf6   :  { %513 = vmatpush.bf16.msra.mxu1 %v1160_v50  ;;  %952 = vmatpush.bf16.msra.mxu3 %v1160_v50  ;;  %v942_v50 = vld [vmem:[%s1271_s3 + $0x28] sm:$0xff] }
  0xf8   :  { %v618_v56 = vpop.permute.xlu2 %617 }
  0xf9   :  { %v623_v40 = vperm.slane %v618_v56, %v1148_v61 }
  0xfa   :  { %514 = vmatpush.bf16.msra.mxu1 %v1162_v59  ;;  %953 = vmatpush.bf16.msra.mxu3 %v1162_v59  ;;  %v943_v59 = vld [vmem:[%s1271_s3 + $0x30] sm:$0xff] }
  0xfd   :  { %515 = vmatmul.bf16.vlgmr.msra.gmra.mxu1 %v937_v2  ;;  %535 = vmatmul.bf16.vlgmr.msra.gmra.mxu3 %v941_v3 }
 0x10d   :  { %520 = vmatmul.bf16.gmra.mxu1 %v938_v4  ;;  %540 = vmatmul.bf16.gmra.mxu3 %v942_v50 }
 0x11d   :  { %525 = vmatmul.bf16.gmra.mxu1 %v939_v5  ;;  %545 = vmatmul.bf16.gmra.mxu3 %v943_v59  ;;  %v668_v5 = vperm.slane %v663_v24, %v1148_v61  ;;  %v758_v59 = vunpack.c.l.bf16 %v686_v48  ;;  %v650_v24 = vperm.slane %v645_v35, %v1148_v61  ;;  %v752_v48 = vunpack.c.l.bf16 %v632_v49 }
 0x11f   :  { %v756_v52 = vunpack.c.l.bf16 %v668_v5 }
 0x12d   :  { %530 = vmatmul.bf16.gmra.mxu1 %v940_v6  ;;  %550 = vmatmul.bf16.gmra.mxu3 %v944_v7  ;;  %v609_v7 = vpop.permute.xlu1 %608 }
 0x17a   :  { %v1210_v8 = vpop.f32.mrf.mxu1 }
 0x180   :  { %v1212_v9 = vpop.f32.mrf.mxu3 }
 0x181   :  { %v564_v0 = vpack.c.bf16 %v1212_v9, %v1212_v9 }
 0x182   :  { %v1214_v10 = vpop.f32.mrf.mxu1 }
 0x183   :  { %v740_v21 = vunpack.c.l.bf16 %v564_v0 }
 0x188   :  { %v538_v11 = vpop.f32.mrf.mxu3 }
 0x189   :  { %v565_v54 = vpack.c.bf16 %v538_v11, %v538_v11 }
 0x18a   :  { %v1216_v12 = vpop.f32.mrf.mxu1 }
 0x18b   :  { %v741_v6 = vunpack.c.l.bf16 %v565_v54  ;;  %v591_v54 = vpop.permute.xlu0 %590 }
 0x190   :  { %v541_v13 = vpop.f32.mrf.mxu3 }
 0x191   :  { %v566_v53 = vpack.c.bf16 %v541_v13, %v541_v13 }
 0x192   :  { %v1218_v14 = vpop.f32.mrf.mxu1 }
 0x193   :  { %v742_v2 = vunpack.c.l.bf16 %v566_v53 }
 0x195   :  { %v774_v9 = vadd.f32 %v758_v59, %v742_v2 }
 0x198   :  { %v543_v15 = vpop.f32.mrf.mxu3 }
 0x199   :  { %v567_v36 = vpack.c.bf16 %v543_v15, %v543_v15 }
 0x19a   :  { %v1220_v18 = vpop.f32.mrf.mxu1 }
 0x19b   :  { %v743_v58 = vunpack.c.l.bf16 %v567_v36 }
 0x19d   :  { %v775_v11 = vadd.f32 %v759_v62, %v743_v58  ;;  %v751_v62 = vunpack.c.l.bf16 %v623_v40 }
 0x1a0   :  { %v546_v19 = vpop.f32.mrf.mxu3 }
 0x1a1   :  { %v568_v31 = vpack.c.bf16 %v546_v19, %v546_v19  ;;  %v757_v19 = vunpack.c.l.bf16 %v677_v63 }
 0x1a2   :  { %v1222_v23 = vpop.f32.mrf.mxu1 }
 0x1a3   :  { %v744_v44 = vunpack.c.l.bf16 %v568_v31  ;;  %v561_v46 = vpack.c.bf16 %v1222_v23, %v1222_v23  ;;  %v772_v31 = vadd.f32 %v756_v52, %v740_v21  ;;  %v559_v23 = vpack.c.bf16 %v1218_v14, %v1218_v14 }
 0x1a4   :  { %v557_v14 = vpack.c.bf16 %v1214_v10, %v1214_v10 }
 0x1a5   :  { %v776_v3 = vadd.f32 %v760_v55, %v744_v44  ;;  %v737_v36 = vunpack.c.l.bf16 %v561_v46  ;;  %v735_v55 = vunpack.c.l.bf16 %v559_v23 }
 0x1a7   :  { %v824_v43 = vmax.f32 %v776_v3, 0.0  ;;  %v596_v3 = vperm.slane %v591_v54, %v1148_v61  ;;  %v767_v10 = vadd.f32 %v751_v62, %v735_v55 }
 0x1a8   :  { %v548_v22 = vpop.f32.mrf.mxu3 }
 0x1a9   :  { %v569_v28 = vpack.c.bf16 %v548_v22, %v548_v22 }
 0x1aa   :  { %v1225_v51 = vpop.f32.mrf.mxu1 }
 0x1ab   :  { %v745_v37 = vunpack.c.l.bf16 %v569_v28  ;;  %v562_v22 = vpack.c.bf16 %v1225_v51, %v1225_v51  ;;  %v823_v28 = vmax.f32 %v775_v11, 0.0  ;;  %v560_v51 = vpack.c.bf16 %v1220_v18, %v1220_v18 }
 0x1ac   :  { %v558_v18 = vpack.c.bf16 %v1216_v12, %v1216_v12  ;;  %v556_v12 = vpack.c.bf16 %v1210_v8, %v1210_v8  ;;  %v815_v8 = vmax.f32 %v767_v10, 0.0 }
 0x1ad   :  { %v777_v60 = vadd.f32 %v761_v39, %v745_v37  ;;  %v753_v39 = vunpack.c.l.bf16 %v641_v30  ;;  %v736_v53 = vunpack.c.l.bf16 %v560_v51 }
 0x1ae   :  { %v734_v63 = vunpack.c.l.bf16 %v558_v18 }
 0x1af   :  { %v825_v16 = vmax.f32 %v777_v60, 0.0  ;;  %v769_v57 = vadd.f32 %v753_v39, %v737_v36  ;;  %v768_v0 = vadd.f32 %v752_v48, %v736_v53 }
 0x1b0   :  { %v551_v25 = vpop.f32.mrf.mxu3 }
 0x1b1   :  { %v570_v26 = vpack.c.bf16 %v551_v25, %v551_v25  ;;  %v773_v25 = vadd.f32 %v757_v19, %v741_v6  ;;  %v834_v27 = vpack.c.bf16 %v825_v16, %v824_v43  ;;  %v817_v5 = vmax.f32 %v769_v57, 0.0 }
 0x1b2   :  { %v533_v1 = vpop.f32.mrf.mxu1  ;;  %v732_v6 = vunpack.c.l.bf16 %v556_v12  ;;  %v816_v11 = vmax.f32 %v768_v0, 0.0  ;;  %v838_v43 = vstv %s1273_s6 }
 0x1b3   :  { %v746_v32 = vunpack.c.l.bf16 %v570_v26  ;;  %v563_v13 = vpack.c.bf16 %v533_v1, %v533_v1  ;;  %v821_v35 = vmax.f32 %v773_v25, 0.0 }
 0x1b4   :  { %v830_v16 = vpack.c.bf16 %v817_v5, %v816_v11 }
 0x1b5   :  { %v778_v45 = vadd.f32 %v762_v33, %v746_v32  ;;  %v739_v26 = vunpack.c.l.bf16 %v563_v13  ;;  %v738_v32 = vunpack.c.l.bf16 %v562_v22  ;;  %v822_v33 = vmax.f32 %v774_v9, 0.0  ;;  %v836_v22 = vld [vmem:[%s1272_s5] sm:$0x1] }
 0x1b6   :  { %v748_v13 = vunpack.c.l.bf16 %v596_v3 }
 0x1b7   :  { %v826_v50 = vmax.f32 %v778_v45, 0.0  ;;  %v771_v37 = vadd.f32 %v755_v29, %v739_v26  ;;  %v820_v45 = vmax.f32 %v772_v31, 0.0 }
 0x1b8   :  { %v553_v34 = vpop.f32.mrf.mxu3  ;;  %v764_v17 = vadd.f32 %v748_v13, %v732_v6 }
 0x1b9   :  { %v571_v38 = vpack.c.bf16 %v553_v34, %v553_v34  ;;  %v754_v34 = vunpack.c.l.bf16 %v650_v24  ;;  %v819_v58 = vmax.f32 %v771_v37, 0.0  ;;  %v832_v60 = vpack.c.bf16 %v821_v35, %v820_v45 }
 0x1bb   :  { %v747_v47 = vunpack.c.l.bf16 %v571_v38  ;;  %v833_v38 = vpack.c.bf16 %v823_v28, %v822_v33  ;;  %v770_v44 = vadd.f32 %v754_v34, %v738_v32 }
 0x1bd   :  { %v779_v42 = vadd.f32 %v763_v41, %v747_v47  ;;  %v600_v41 = vpop.permute.xlu1 %599  ;;  %v614_v47 = vperm.slane %v609_v7, %v1148_v61  ;;  %v818_v1 = vmax.f32 %v770_v44, 0.0 }
 0x1bf   :  { %v827_v4 = vmax.f32 %v779_v42, 0.0  ;;  %v605_v42 = vperm.slane %v600_v41, %v1148_v61  ;;  %v750_v2 = vunpack.c.l.bf16 %v614_v47  ;;  %v812_v61 = vmax.f32 %v764_v17, 0.0 }
 0x1c1   :  { %v835_v15 = vpack.c.bf16 %v827_v4, %v826_v50  ;;  %v733_v4 = vunpack.c.l.bf16 %v557_v14  ;;  %v831_v50 = vpack.c.bf16 %v819_v58, %v818_v1  ;;  %v749_v59 = vunpack.c.l.bf16 %v605_v42 }
 0x1c2   :  { %v766_v7 = vadd.f32 %v750_v2, %v734_v63 }
 0x1c3   :  { %839 = vmatpush.bf16.msrb.mxu2 %v835_v15  ;;  %v765_v15 = vadd.f32 %v749_v59, %v733_v4 }
 0x1c4   :  { %v814_v19 = vmax.f32 %v766_v7, 0.0 }
 0x1c5   :  { %v813_v21 = vmax.f32 %v765_v15, 0.0 }
 0x1c6   :  { %v829_v20 = vpack.c.bf16 %v815_v8, %v814_v19 }
 0x1c7   :  { %840 = vmatpush.bf16.msrb.mxu2 %v834_v27  ;;  %v828_v9 = vpack.c.bf16 %v813_v21, %v812_v61 }
 0x1cb   :  { %841 = vmatpush.bf16.msrb.mxu2 %v833_v38 }
 0x1cf   :  { %842 = vmatpush.bf16.msrb.mxu2 %v832_v60 }
 0x1d3   :  { %843 = vmatpush.bf16.msrb.mxu2 %v831_v50 }
 0x1d7   :  { %844 = vmatpush.bf16.msrb.mxu2 %v830_v16 }
 0x1db   :  { %845 = vmatpush.bf16.msrb.mxu2 %v829_v20 }
 0x1df   :  { %846 = vmatpush.bf16.msrb.mxu2 %v828_v9 }
 0x1e2   :  { %847 = vmatmul.bf16.vlgmr.msrb.gmra.mxu2 %v836_v22 }
 0x265   :  { %v848_v52 = vpop.f32.mrf.mxu2 }
 0x266   :  { %v849_v24 = vadd.f32 %v848_v52, %v838_v43 }
 0x268   :  { %852 = vst [vmem:[%s1274_s7] sm:$0x1] %v849_v24 }
 0x26d   :  { %v850_v25 = vpop.f32.mrf.mxu2 }

</bundles_post_ra>
